<compile_context>
chip_gen: v5e
topology: v5e:2x2
jax: 0.10.0
libtpu: 0.0.40
codegen_flags: <defaults>
</compile_context>

<pallas_src>
import jax
import jax.numpy as jnp
from jax.experimental import pallas as pl
from jax.experimental.pallas import tpu as pltpu

_ROW_PACK = 4            # original rows packed per 128-lane output row
_TILE_MP_MAX = 4096      # packed rows per grid step (= 16384 original rows)
_MIN_ROWS_FOR_PALLAS = 1024


def _round_up(x, m):
    return (x + m - 1) // m * m


def _linear_relu_kernel(x_ref, w_ref, b_ref, o_ref):
    # x_ref: (TILE_MP, 12)  f32  -- 4 original rows packed per packed row
    # w_ref: (12, 128)      f32  -- block-diagonal: 4 copies of W.T (3x32)
    # b_ref: (1, 128)       f32  -- bias tiled 4x
    # o_ref: (TILE_MP, 128) f32  -- lane-dense output (4 x 32-feature rows)
    y = jnp.dot(x_ref[...], w_ref[...], preferred_element_type=jnp.float32)
    y = y + b_ref[...]                  # broadcast bias over rows
    # canvas.Placeholder (kernel_1) == identity
    y = jnp.maximum(y, 0.0)             # ReLU
    # canvas.Placeholder (kernel_2) == identity
    o_ref[...] = y.astype(o_ref.dtype)


@jax.jit
def _forward_pallas(x, weight, bias):
    B, S, Cin = x.shape
    Cout = weight.shape[0]
    M = B * S
    kp = _ROW_PACK * Cin                # 12
    np_ = _ROW_PACK * Cout              # 128

    # ---- packing glue (fused under jit, one-time cost per shape) -----------
    w_t = weight.T.astype(jnp.float32)                                  # (3, 32)
    w_blk = jnp.kron(jnp.eye(_ROW_PACK, dtype=jnp.float32), w_t)        # (12, 128)
    b_tiled = jnp.tile(bias.astype(jnp.float32), _ROW_PACK).reshape(1, np_)

    # Pad rows so the packed-row count is a multiple of the tile size
    # (tile is always a multiple of 8 -> satisfies the (8,128) rule).
    m_pack = -(-M // _ROW_PACK)
    if _round_up(m_pack, 8) <= _TILE_MP_MAX:
        tile_mp = _round_up(m_pack, 8)      # single tile, zero padding waste
        m_pack_pad = tile_mp
    else:
        tile_mp = _TILE_MP_MAX
        m_pack_pad = _round_up(m_pack, tile_mp)
    m_pad = m_pack_pad * _ROW_PACK

    x2d = x.reshape(M, Cin).astype(jnp.float32)
    x2d = jnp.pad(x2d, ((0, m_pad - M), (0, 0)))
    x_packed = x2d.reshape(m_pack_pad, kp)          # row-major: free re-view

    grid = (m_pack_pad // tile_mp,)

    out_packed = pl.pallas_call(
        _linear_relu_kernel,
        out_shape=jax.ShapeDtypeStruct((m_pack_pad, np_), jnp.float32),
        grid_spec=pltpu.PrefetchScalarGridSpec(
            num_scalar_prefetch=0,
            grid=grid,
            in_specs=[
                pl.BlockSpec((tile_mp, kp), lambda i: (i, 0)),
                pl.BlockSpec((kp, np_), lambda i: (0, 0)),
                pl.BlockSpec((1, np_), lambda i: (0, 0)),
            ],
            out_specs=pl.BlockSpec((tile_mp, np_), lambda i: (i, 0)),
        ),
        compiler_params=pltpu.CompilerParams(
            # Independent row tiles -> "parallel" (megacore sharding on v7x).
            dimension_semantics=("parallel",)),
    )(x_packed, w_blk, b_tiled)

    # (m_pack_pad, 128) -> (m_pad, 32) is the same memory row-major.
    out2d = out_packed.reshape(m_pad, Cout)[:M]
    return out2d.reshape(B, S, Cout).astype(x.dtype)


@jax.jit
def _forward_xla(x, weight, bias):
    return jnp.maximum(jnp.einsum("bsc,oc->bso", x, weight) + bias, 0.0)


def example_model_none_spatial(x, weight, bias, *, force_pallas=False):
    """relu(x @ weight.T + bias); x: [B, S, 3], weight: [32, 3] (PyTorch layout), bias: [32]."""
    M = x.shape[0] * x.shape[1]
    if not force_pallas and M < _MIN_ROWS_FOR_PALLAS:
        # A pallas_call is pure fixed overhead at tiny sizes; let XLA fuse it.
        return _forward_xla(x, weight, bias)
    return _forward_pallas(x, weight, bias)


if __name__ == "__main__":
    key = jax.random.PRNGKey(0)
    k_x, k_w, k_b, k_x2, k_x3 = jax.random.split(key, 5)

    B, S, Cin, Cout = 2, 8, 3, 32

    # PyTorch nn.Linear default init: U(-1/sqrt(fan_in), +1/sqrt(fan_in))
    bound = 1.0 / (Cin ** 0.5)
    weight = jax.random.uniform(k_w, (Cout, Cin), jnp.float32, -bound, bound)
    bias = jax.random.uniform(k_b, (Cout,), jnp.float32, -bound, bound)

    # Small demo shape, forced through the Pallas path to exercise the kernel.
    x = jax.random.normal(k_x, (B, S, Cin), jnp.float32)
    out = example_model_none_spatial(x, weight, bias, force_pallas=True)
    out = jax.block_until_ready(out)
    ref = jnp.maximum(jnp.einsum("bsc,oc->bso", x, weight) + bias, 0.0)
    assert out.shape == (B, S, Cout)
    assert jnp.allclose(out, ref, atol=1e-5, rtol=1e-5)

    # Moderate shape: single big tile (no padding waste), row count not a
    # multiple of the pack factor -> exercises the tail-padding path.
    B2, S2 = 2, 4100        # M = 8200 rows -> 2050 packed rows -> 1 tile of 2056
    x2 = jax.random.normal(k_x2, (B2, S2, Cin), jnp.float32)
    out2 = jax.block_until_ready(example_model_none_spatial(x2, weight, bias))
    ref2 = jnp.maximum(jnp.einsum("bsc,oc->bso", x2, weight) + bias, 0.0)
    assert out2.shape == (B2, S2, Cout)
    assert jnp.allclose(out2, ref2, atol=1e-5, rtol=1e-5)

    # Larger shape exercising the multi-tile (grid > 1) pipelined path.
    B3, S3 = 4, 8192        # M = 32768 rows -> 8192 packed rows -> 2 tiles of 4096
    x3 = jax.random.normal(k_x3, (B3, S3, Cin), jnp.float32)
    out3 = jax.block_until_ready(example_model_none_spatial(x3, weight, bias))
    ref3 = jnp.maximum(jnp.einsum("bsc,oc->bso", x3, weight) + bias, 0.0)
    assert out3.shape == (B3, S3, Cout)
    assert jnp.allclose(out3, ref3, atol=1e-5, rtol=1e-5)

    print("KERNEL_OK")
</pallas_src>

<mosaic_0001>
module attributes {stable_mosaic.version = 11 : i64} {
  func.func @_linear_relu_kernel(%arg0: i32, %arg1: memref<8x12xf32, #tpu.memory_space<vmem>>, %arg2: memref<12x128xf32, #tpu.memory_space<vmem>>, %arg3: memref<1x128xf32, #tpu.memory_space<vmem>>, %arg4: memref<8x128xf32, #tpu.memory_space<vmem>>) attributes {dimension_semantics = [#tpu.dimension_semantics<parallel>], iteration_bounds = array<i64: 1>, scalar_prefetch = 0 : i64, scratch_operands = 0 : i64, tpu.core_type = #tpu.core_type<tc>, window_params = [{transform_indices = @transform_0, window_bounds = array<i64: 8, 12>}, {pipeline_mode = #tpu.pipeline_mode<synchronous>, transform_indices = @transform_1, window_bounds = array<i64: 12, 128>}, {pipeline_mode = #tpu.pipeline_mode<synchronous>, transform_indices = @transform_2, window_bounds = array<i64: 1, 128>}, {transform_indices = @transform_3, window_bounds = array<i64: 8, 128>}]} {
    %c0 = arith.constant 0 : index
    %c0_0 = arith.constant 0 : index
    %0 = vector.load %arg1[%c0, %c0_0] : memref<8x12xf32, #tpu.memory_space<vmem>>, vector<8x12xf32>
    %c0_1 = arith.constant 0 : index
    %c0_2 = arith.constant 0 : index
    %1 = vector.load %arg2[%c0_1, %c0_2] : memref<12x128xf32, #tpu.memory_space<vmem>>, vector<12x128xf32>
    %cst = arith.constant dense<0.000000e+00> : vector<8x128xf32>
    %2 = tpu.matmul %0, %1, %cst {dimension_numbers = #tpu.dot_dimension_numbers<[1], [0], [0], [1], [0, 0, 1, 1], [], []>} : vector<8x12xf32>, vector<12x128xf32>, vector<8x128xf32> -> vector<8x128xf32>
    %c0_3 = arith.constant 0 : index
    %c0_4 = arith.constant 0 : index
    %3 = vector.load %arg3[%c0_3, %c0_4] : memref<1x128xf32, #tpu.memory_space<vmem>>, vector<1x128xf32>
    %4 = vector.broadcast %3 : vector<1x128xf32> to vector<8x128xf32>
    %5 = arith.addf %2, %4 : vector<8x128xf32>
    %cst_5 = arith.constant 0.000000e+00 : f32
    %6 = vector.broadcast %cst_5 : f32 to vector<8x128xf32>
    %7 = arith.maximumf %5, %6 : vector<8x128xf32>
    %c0_6 = arith.constant 0 : index
    %c0_7 = arith.constant 0 : index
    %8 = vector.load %arg4[%c0_6, %c0_7] : memref<8x128xf32, #tpu.memory_space<vmem>>, vector<8x128xf32>
    tpu.vector_store %arg4[%c0_6, %c0_7], %7 {strides = array<i32>} : memref<8x128xf32, #tpu.memory_space<vmem>>, vector<8x128xf32>,
    return
  }
  func.func @transform_0(%arg0: i32) -> (i32, i32) {
    %c0_i32 = arith.constant 0 : i32
    %c0_i32_0 = arith.constant 0 : i32
    return %arg0, %c0_i32 : i32, i32
  }
  func.func @transform_1(%arg0: i32) -> (i32, i32) {
    %c0_i32 = arith.constant 0 : i32
    %c0_i32_0 = arith.constant 0 : i32
    %c0_i32_1 = arith.constant 0 : i32
    return %c0_i32, %c0_i32_0 : i32, i32
  }
  func.func @transform_2(%arg0: i32) -> (i32, i32) {
    %c0_i32 = arith.constant 0 : i32
    %c0_i32_0 = arith.constant 0 : i32
    %c0_i32_1 = arith.constant 0 : i32
    return %c0_i32, %c0_i32_0 : i32, i32
  }
  func.func @transform_3(%arg0: i32) -> (i32, i32) {
    %c0_i32 = arith.constant 0 : i32
    %c0_i32_0 = arith.constant 0 : i32
    return %arg0, %c0_i32 : i32, i32
  }
}

</mosaic_0001>

<bundles_post_ra>
// kernel: tile.8
= control target key start
LH: loop header
LB: loop body
LE: loop exit
PB: predicated region body
PF: predicated region fallthrough
CT: control target
= control target key end

     0   :  { %s22_s0 = inlined_call_operand.vmem [shape: f32[32], index: 0, kind: input, shape index: {}]   ;;  %s23_s1 = inlined_call_operand.vmem [shape: f32[4,32], index: 1, kind: output, shape index: {}]  }
   0x1   :  { %v4_v0 = vld [vmem:[%s22_s0] ss:$0 sm:$0xff] }
   0x2   :  { %5 = vst [vmem:[%s23_s1] sm:$0xf] %v4_v0 }

// kernel: tile.9
= control target key start
LH: loop header
LB: loop body
LE: loop exit
PB: predicated region body
PF: predicated region fallthrough
CT: control target
= control target key end

     0   :  { %s37_s8 = smov 32   ;;  %s38_s9 = smov 64   ;;  %vm7_vm0 = vcmask 261120   ;;  %vm13_vm1 = vcmask 1048320   ;;  %vm19_vm2 = vcmask 785920   ;;  %vm25_vm3 = vcmask 523520   ;;  %s55_s0 = inlined_call_operand.vmem [shape: f32[4,32], index: 0, kind: input, shape index: {}]   ;;  %s56_s1 = inlined_call_operand.vmem [shape: f32[1,128], index: 1, kind: output, shape index: {}]  }
   0x1   :  { %v4_v0 = vld [vmem:[%s55_s0] sm:$0xf]  ;;  %s36_s0 = smov 96  }
   0x2   :  { %5 = vst [vmem:[#allocation1] sm:$0xf] %v4_v0 }
   0x9   :  { %v10_v1 = vld [vmem:[#allocation1 + $0x3] sm:$0x1]   ;;  %v22_v2 = vld [vmem:[#allocation1 + $0x1] sm:$0x1]   ;;  %v16_v3 = vld [vmem:[#allocation1 + $0x2] sm:$0x1]  }
   0xa   :  { %11 = vrot.lane.b32.xlu0 %v10_v1, %s36_s0  ;;  %23 = vrot.lane.b32.xlu1 %v22_v2, %s37_s8  ;;  %v6_v4 = vld [vmem:[#allocation1] sm:$0x1]  }
   0xb   :  { %8 = vst.msk [vmem:[#allocation0] sm:$0x1] %vm7_vm0, %v6_v4  }
  0x12   :  { %17 = vrot.lane.b32.xlu0 %v16_v3, %s38_s9 }
  0x7c   :  { %v12_v5 = vpop.permute.xlu0 %11   ;;  %v24_v6 = vpop.permute.xlu1 %23  }
  0x7d   :  { %14 = vst.msk [vmem:[#allocation0] sm:$0x1] %vm13_vm1, %v12_v5  }
  0x84   :  { %v18_v7 = vpop.permute.xlu0 %17  }
  0x85   :  { %20 = vst.msk [vmem:[#allocation0] sm:$0x1] %vm19_vm2, %v18_v7  }
  0x86   :  { %26 = vst.msk [vmem:[#allocation0] sm:$0x1] %vm25_vm3, %v24_v6  }
  0x8d   :  { %v29_v8 = vld [vmem:[#allocation0] sm:$0x1] }
  0x8e   :  { %32 = vst [vmem:[%s56_s1] sm:$0x1] %v29_v8 }

// kernel: _forward_pallas.1
= control target key start
LH: loop header
LB: loop body
LE: loop exit
PB: predicated region body
PF: predicated region fallthrough
CT: control target
= control target key end

     0   :  { %vm25_vm0 = vcmask 1043456   ;;  %vm21_vm1 = vcmask 97280   ;;  %s93_s1 = inlined_call_operand.vmem [shape: f32[12,128], index: 1, kind: input, shape index: {}]   ;;  %s94_s0 = inlined_call_operand.vmem [shape: f32[8,12], index: 0, kind: input, shape index: {}]   ;;  %s95_s2 = inlined_call_operand.vmem [shape: f32[1,128], index: 2, kind: input, shape index: {}]   ;;  %s96_s3 = inlined_call_operand.vmem [shape: f32[8,128], index: 3, kind: output, shape index: {}]  }
   0x1   :  { %v16_v0 = vld [vmem:[%s93_s1 + $0x8] sm:$0xf]  ;;  %v15_v1 = vld [vmem:[%s93_s1] sm:$0xff] }
   0x2   :  { %55 = vmatpush.msk.msra.mxu0 %vm25_vm0, %v16_v0  ;;  %v14_v2 = vld [vmem:[%s94_s0] sm:$0xff] }
   0x3   :  { %v57_v3 = vld [vmem:[%s95_s2] ss:$0 sm:$0xff] }
   0x4   :  { %44 = vmatpush.msra.mxu0 %v15_v1 }
   0x5   :  { %56 = vmatmul.msk.f32.vlgmr.msra.gmra.mxu0 %vm21_vm1, %v14_v2 }
  0x82   :  { %v46_v4 = vpop.f32.mrf.mxu0 }
  0x83   :  { %v47_v5 = vadd.f32 %v57_v3, %v46_v4 }
  0x85   :  { %v49_v6 = vmax.f32 %v47_v5, 0.0 }
  0x87   :  { %50 = vst [vmem:[%s96_s3] sm:$0xff] %v49_v6 }

</bundles_post_ra>
